<compile_context>
chip_gen: v7x
topology: tpu7x:2x2x1
jax: 0.10.0
libtpu: 0.0.40
codegen_flags: <defaults>
</compile_context>

<pallas_src>
import functools

import jax
import jax.numpy as jnp
from jax.experimental import pallas as pl
from jax.experimental.pallas import tpu as pltpu

EPSILON = 1e-8


def _round_up(n, m):
    return ((n + m - 1) // m) * m


def _vmem_limit_bytes():
    # Generation-aware scoped-VMEM limit: default scoped limits (16/32 MiB) are too small
    # for production tiles; leave headroom below physical (128 MiB v5e/v6e, 64 MiB v7x).
    try:
        cap = pltpu.get_tpu_info().vmem_capacity_bytes
    except Exception:
        cap = 64 << 20
    return int(min(cap - (8 << 20), 100 << 20))


# --------------------------------------------------------------------------------------
# Stage 1: pointwise 1x1 conv + PReLU1; store y (bf16, zeroed beyond T) and GN1 row sums.
# --------------------------------------------------------------------------------------
def _stage1_kernel(x_ref, w1_ref, hp_ref, y_ref, st_ref, *, T, tT):
    t = pl.program_id(1)
    b1 = hp_ref[:, 0:1]                     # (H, 1)
    a1 = hp_ref[:, 1:2]                     # (H, 1)

    # (H, C) @ (C, tT) on the MXU, bf16 operands, f32 accumulation.
    y = jnp.dot(w1_ref[...], x_ref[...], preferred_element_type=jnp.float32) + b1
    y = jnp.where(y > 0, y, y * a1)         # PReLU 1

    # (1, tT) global lane index; broadcasts along sublanes in the compares/selects.
    lane = jax.lax.broadcasted_iota(jnp.int32, (1, tT), 1) + t * tT
    ym = jnp.where(lane < T, y, 0.0)        # zero padded lanes once (feeds stats AND store)

    y_ref[...] = ym.astype(y_ref.dtype)

    # Lane-only (XLU) reductions; the tiny sublane/tile finish happens in JAX outside.
    st_ref[:, 0:1] = jnp.sum(ym, axis=1, keepdims=True)
    st_ref[:, 1:2] = jnp.sum(ym * ym, axis=1, keepdims=True)


# --------------------------------------------------------------------------------------
# Stage 2: GN1 apply + depthwise dilated conv (halo blocks) + PReLU2; store y2 + GN2 sums.
# --------------------------------------------------------------------------------------
def _stage2_kernel(gn1_ref, yl_ref, yc_ref, yr_ref, wd_ref, hp_ref, y2_ref, st_ref,
                   *, T, T_out, tT, hb, K, dilation, padding):
    t = pl.program_id(1)
    W = tT + 2 * hb

    m1 = gn1_ref[0:1, 0:1]                  # (1, 1) mean
    r1 = gn1_ref[0:1, 1:2]                  # (1, 1) rstd
    g1 = hp_ref[:, 0:1]
    be1 = hp_ref[:, 1:2]
    bd = hp_ref[:, 2:3]
    a2 = hp_ref[:, 3:4]

    # Fold GN1 into a per-channel affine.
    A1 = r1 * g1                            # (H, 1)
    C1 = be1 - m1 * A1                      # (H, 1)

    cat = jnp.concatenate([yl_ref[...], yc_ref[...], yr_ref[...]], axis=1)  # (H, W) bf16
    yn = cat.astype(jnp.float32) * A1 + C1

    # The conv's zero-padding region (g < 0 or g >= T) was stored as 0 in HBM but the affine
    # maps 0 -> C1; re-zero it with ONE (1, W)-mask select (replaces the K per-tap selects).
    g = jax.lax.broadcasted_iota(jnp.int32, (1, W), 1) + (t * tT - hb)
    yn = jnp.where((g >= 0) & (g < T), yn, 0.0)

    # Depthwise dilated conv: static lane-offset windows of the halo'd slab.
    wd = wd_ref[...]
    off0 = hb - padding
    acc = wd[:, 0:1] * yn[:, off0:off0 + tT]
    for k in range(1, K):                   # static unroll over taps
        off = hb + k * dilation - padding
        acc = acc + wd[:, k:k + 1] * yn[:, off:off + tT]
    acc = acc + bd

    y2 = jnp.where(acc > 0, acc, acc * a2)  # PReLU 2

    lane = jax.lax.broadcasted_iota(jnp.int32, (1, tT), 1) + t * tT
    y2m = jnp.where(lane < T_out, y2, 0.0)

    y2_ref[...] = y2m.astype(y2_ref.dtype)
    st_ref[:, 0:1] = jnp.sum(y2m, axis=1, keepdims=True)
    st_ref[:, 1:2] = jnp.sum(y2m * y2m, axis=1, keepdims=True)


# --------------------------------------------------------------------------------------
# Stage 3: GN2 apply + fused res/skip 1x1 convs; two separate lane-dense outputs.
# --------------------------------------------------------------------------------------
def _stage3_kernel(gn2_ref, y2_ref, hp_ref, wo_ref, bo_ref, res_ref, skip_ref, *, C):
    m2 = gn2_ref[0:1, 0:1]
    r2 = gn2_ref[0:1, 1:2]
    g2 = hp_ref[:, 0:1]
    be2 = hp_ref[:, 1:2]

    A2 = r2 * g2
    C2 = be2 - m2 * A2
    yn2 = (y2_ref[...].astype(jnp.float32) * A2 + C2).astype(jnp.bfloat16)

    # Fused [res_out; skip_out]: one (2C, H) @ (H, tT) MXU matmul.
    out = jnp.dot(wo_ref[...], yn2, preferred_element_type=jnp.float32) + bo_ref[...]
    res_ref[...] = out[:C, :].astype(res_ref.dtype)
    skip_ref[...] = out[C:, :].astype(skip_ref.dtype)


def _finish_stats(part, count, eps):
    """part: (B, nTiles, H, 2) row sums -> (B, 1, 2) [mean, rstd]."""
    s = jnp.sum(part[..., 0], axis=(1, 2))
    ss = jnp.sum(part[..., 1], axis=(1, 2))
    mean = s / count
    var = jnp.maximum(ss / count - mean * mean, 0.0)
    rstd = jax.lax.rsqrt(var + eps)
    return jnp.stack([mean, rstd], axis=-1)[:, None, :].astype(jnp.float32)


def depth_conv1d_forward(x, params, *, kernel_size, dilation, padding,
                         tile_t=1024, out_dtype=jnp.float32, trim=True):
    """x: (B, C, T) float32. Returns (residual, skip), each (B, C, T_out)."""
    B, C, T = x.shape
    H = params["w1"].shape[0]
    K = kernel_size
    T_out = T + 2 * padding - dilation * (K - 1)
    assert T_out >= 1, "invalid kernel/dilation/padding combination"

    # ---- tiling ----
    halo_l = padding
    halo_r = max(dilation * (K - 1) - padding, 0)
    hb = max(128, _round_up(max(halo_l, halo_r, 1), 128))    # halo block (lane multiple)
    Tneed = max(T, T_out)
    tT = max(_round_up(min(tile_t, Tneed), 128), hb)
    tT = _round_up(tT, hb)                                    # tile is a multiple of hb
    nT = pl.cdiv(Tneed, tT)
    Ttot = nT * tT
    nTa = nT + 1                                              # + one all-zero guard tile
    Ttot_a = nTa * tT
    r = tT // hb
    nHb = nTa * r                                             # hb-granules in y buffer
    assert halo_l <= hb and halo_r <= hb

    vmem_limit = _vmem_limit_bytes()

    # ---- inputs / parameter packing ----
    x_p = jnp.pad(x, ((0, 0), (0, 0), (0, Ttot_a - T))).astype(jnp.bfloat16)
    f32 = jnp.float32
    ones_h = jnp.ones((H, 1), f32)
    w1 = params["w1"].astype(jnp.bfloat16)                                       # (H, C)
    hpA = jnp.concatenate([params["b1"], params["a1"] * ones_h], axis=1).astype(f32)   # (H, 2)
    hpB = jnp.concatenate([params["g1"], params["be1"], params["bd"],
                           params["a2"] * ones_h], axis=1).astype(f32)            # (H, 4)
    hpC = jnp.concatenate([params["g2"], params["be2"]], axis=1).astype(f32)      # (H, 2)
    wd = params["wd"].astype(f32)                                                 # (H, K)
    wo = jnp.concatenate([params["wr"], params["ws"]], axis=0).astype(jnp.bfloat16)  # (2C, H)
    bo = jnp.concatenate([params["br"], params["bs"]], axis=0).astype(f32)           # (2C, 1)

    cparams = pltpu.CompilerParams(
        dimension_semantics=("parallel", "parallel"),
        vmem_limit_bytes=vmem_limit,
    )

    # ---- stage 1 ----
    y_hbm, st1 = pl.pallas_call(
        functools.partial(_stage1_kernel, T=T, tT=tT),
        out_shape=(jax.ShapeDtypeStruct((B, H, Ttot_a), jnp.bfloat16),
                   jax.ShapeDtypeStruct((B, nTa, H, 2), jnp.float32)),
        grid_spec=pltpu.PrefetchScalarGridSpec(
            num_scalar_prefetch=0,
            grid=(B, nTa),
            in_specs=[
                pl.BlockSpec((None, C, tT), lambda b, t: (b, 0, t)),   # x (bf16)
                pl.BlockSpec((H, C), lambda b, t: (0, 0)),             # w1
                pl.BlockSpec((H, 2), lambda b, t: (0, 0)),             # [b1, a1]
            ],
            out_specs=(
                pl.BlockSpec((None, H, tT), lambda b, t: (b, 0, t)),           # y
                pl.BlockSpec((None, None, H, 2), lambda b, t: (b, t, 0, 0)),   # GN1 row sums
            ),
        ),
        compiler_params=cparams,
    )(x_p, w1, hpA)

    gn1 = _finish_stats(st1, float(H * T), EPSILON)             # (B, 1, 2)

    # ---- stage 2 ----
    y2_hbm, st2 = pl.pallas_call(
        functools.partial(_stage2_kernel, T=T, T_out=T_out, tT=tT, hb=hb,
                          K=K, dilation=dilation, padding=padding),
        out_shape=(jax.ShapeDtypeStruct((B, H, Ttot), jnp.bfloat16),
                   jax.ShapeDtypeStruct((B, nT, H, 2), jnp.float32)),
        grid_spec=pltpu.PrefetchScalarGridSpec(
            num_scalar_prefetch=0,
            grid=(B, nT),
            in_specs=[
                pl.BlockSpec((None, 1, 2), lambda b, t: (b, 0, 0)),                       # GN1 stats
                pl.BlockSpec((None, H, hb), lambda b, t: (b, 0, (t * r - 1 + nHb) % nHb)),  # left halo
                pl.BlockSpec((None, H, tT), lambda b, t: (b, 0, t)),                      # current tile
                pl.BlockSpec((None, H, hb), lambda b, t: (b, 0, (t + 1) * r)),            # right halo
                pl.BlockSpec((H, K), lambda b, t: (0, 0)),                                # wd
                pl.BlockSpec((H, 4), lambda b, t: (0, 0)),                                # [g1,be1,bd,a2]
            ],
            out_specs=(
                pl.BlockSpec((None, H, tT), lambda b, t: (b, 0, t)),           # y2
                pl.BlockSpec((None, None, H, 2), lambda b, t: (b, t, 0, 0)),   # GN2 row sums
            ),
        ),
        compiler_params=cparams,
    )(gn1, y_hbm, y_hbm, y_hbm, wd, hpB)

    gn2 = _finish_stats(st2, float(H * T_out), EPSILON)          # (B, 1, 2)

    # ---- stage 3 ----
    res_p, skip_p = pl.pallas_call(
        functools.partial(_stage3_kernel, C=C),
        out_shape=(jax.ShapeDtypeStruct((B, C, Ttot), out_dtype),
                   jax.ShapeDtypeStruct((B, C, Ttot), out_dtype)),
        grid_spec=pltpu.PrefetchScalarGridSpec(
            num_scalar_prefetch=0,
            grid=(B, nT),
            in_specs=[
                pl.BlockSpec((None, 1, 2), lambda b, t: (b, 0, 0)),   # GN2 stats
                pl.BlockSpec((None, H, tT), lambda b, t: (b, 0, t)),  # y2
                pl.BlockSpec((H, 2), lambda b, t: (0, 0)),            # [g2, be2]
                pl.BlockSpec((2 * C, H), lambda b, t: (0, 0)),        # fused [wr; ws]
                pl.BlockSpec((2 * C, 1), lambda b, t: (0, 0)),        # fused [br; bs]
            ],
            out_specs=(
                pl.BlockSpec((None, C, tT), lambda b, t: (b, 0, t)),
                pl.BlockSpec((None, C, tT), lambda b, t: (b, 0, t)),
            ),
        ),
        compiler_params=cparams,
    )(gn2, y2_hbm, hpC, wo, bo)

    if trim and T_out != Ttot:
        return res_p[:, :, :T_out], skip_p[:, :, :T_out]
    return res_p, skip_p


def reference_forward(x, params, *, kernel_size, dilation, padding):
    """Pure-JAX reference mirroring the PyTorch module (non-causal, skip=True).

    Uses the same bf16 staging / bf16-operand-matmul convention as the kernel pipeline.
    """
    B, C, T = x.shape
    H = params["w1"].shape[0]
    K = kernel_size
    T_out = T + 2 * padding - dilation * (K - 1)
    eps = EPSILON

    def prelu(y, a):
        return jnp.where(y > 0, y, a * y)

    # pointwise conv + PReLU1
    y = jnp.einsum("hc,bct->bht", params["w1"].astype(jnp.bfloat16),
                   x.astype(jnp.bfloat16),
                   preferred_element_type=jnp.float32) + params["b1"][None, :, :]
    y = prelu(y, params["a1"][0, 0])

    # GroupNorm(1, H): stats from f32 y, normalization applied to bf16-staged y
    m1 = y.mean(axis=(1, 2), keepdims=True)
    v1 = ((y - m1) ** 2).mean(axis=(1, 2), keepdims=True)
    y_bf = y.astype(jnp.bfloat16).astype(jnp.float32)
    yn = (y_bf - m1) / jnp.sqrt(v1 + eps) * params["g1"][None, :, :] + params["be1"][None, :, :]

    # depthwise dilated conv + PReLU2
    yp = jnp.pad(yn, ((0, 0), (0, 0), (padding, padding)))
    acc = jnp.zeros((B, H, T_out), jnp.float32)
    for k in range(K):
        acc = acc + params["wd"][None, :, k, None] * yp[:, :, k * dilation:k * dilation + T_out]
    acc = acc + params["bd"][None, :, :]
    y2 = prelu(acc, params["a2"][0, 0])

    # GroupNorm 2
    m2 = y2.mean(axis=(1, 2), keepdims=True)
    v2 = ((y2 - m2) ** 2).mean(axis=(1, 2), keepdims=True)
    y2_bf = y2.astype(jnp.bfloat16).astype(jnp.float32)
    yn2 = (y2_bf - m2) / jnp.sqrt(v2 + eps) * params["g2"][None, :, :] + params["be2"][None, :, :]

    yn2_bf = yn2.astype(jnp.bfloat16)
    res = jnp.einsum("ch,bht->bct", params["wr"].astype(jnp.bfloat16), yn2_bf,
                     preferred_element_type=jnp.float32) + params["br"][None, :, :]
    skp = jnp.einsum("ch,bht->bct", params["ws"].astype(jnp.bfloat16), yn2_bf,
                     preferred_element_type=jnp.float32) + params["bs"][None, :, :]
    return res, skp


def _make_params(key, C, H, K):
    ks = jax.random.split(key, 8)
    return {
        # conv1d: (H, C, 1) weight, (H,) bias
        "w1": 0.1 * jax.random.normal(ks[0], (H, C), dtype=jnp.float32),
        "b1": 0.1 * jax.random.normal(ks[1], (H, 1), dtype=jnp.float32),
        "a1": jnp.full((1, 1), 0.25, dtype=jnp.float32),     # PReLU default
        "g1": jnp.ones((H, 1), dtype=jnp.float32),            # GroupNorm affine
        "be1": jnp.zeros((H, 1), dtype=jnp.float32),
        # dconv1d: depthwise (H, 1, K) weight, (H,) bias
        "wd": 0.1 * jax.random.normal(ks[2], (H, K), dtype=jnp.float32),
        "bd": 0.1 * jax.random.normal(ks[3], (H, 1), dtype=jnp.float32),
        "a2": jnp.full((1, 1), 0.25, dtype=jnp.float32),
        "g2": jnp.ones((H, 1), dtype=jnp.float32),
        "be2": jnp.zeros((H, 1), dtype=jnp.float32),
        # res_out / skip_out: (C, H, 1) weight, (C,) bias
        "wr": 0.1 * jax.random.normal(ks[4], (C, H), dtype=jnp.float32),
        "br": 0.1 * jax.random.normal(ks[5], (C, 1), dtype=jnp.float32),
        "ws": 0.1 * jax.random.normal(ks[6], (C, H), dtype=jnp.float32),
        "bs": jnp.zeros((C, 1), dtype=jnp.float32),
    }


if __name__ == "__main__":
    def run_case(B, C, H, T, K, dilation, padding, tile_t):
        key = jax.random.PRNGKey(0)
        kx, kp = jax.random.split(key)
        x = jax.random.normal(kx, (B, C, T), dtype=jnp.float32)
        params = _make_params(kp, C, H, K)

        res, skp = depth_conv1d_forward(
            x, params, kernel_size=K, dilation=dilation, padding=padding, tile_t=tile_t)
        jax.block_until_ready((res, skp))

        res_ref, skp_ref = reference_forward(
            x, params, kernel_size=K, dilation=dilation, padding=padding)
        assert res.shape == res_ref.shape and skp.shape == skp_ref.shape
        assert jnp.allclose(res, res_ref, rtol=1e-2, atol=1e-2), "residual mismatch"
        assert jnp.allclose(skp, skp_ref, rtol=1e-2, atol=1e-2), "skip mismatch"

    # small default-ish config (length-preserving, single T tile)
    run_case(B=2, C=16, H=32, T=64, K=3, dilation=1, padding=1, tile_t=1024)
    # multi-tile config exercising the cross-tile halo path (dilation=2, two T tiles)
    run_case(B=2, C=16, H=32, T=200, K=3, dilation=2, padding=2, tile_t=128)

    print("KERNEL_OK")
</pallas_src>

<mosaic_0001>
module attributes {stable_mosaic.version = 11 : i64} {
  func.func @_stage1_kernel(%arg0: i32, %arg1: i32, %arg2: memref<1x16x128xbf16, #tpu.memory_space<vmem>>, %arg3: memref<32x16xbf16, #tpu.memory_space<vmem>>, %arg4: memref<32x2xf32, #tpu.memory_space<vmem>>, %arg5: memref<1x32x128xbf16, #tpu.memory_space<vmem>>, %arg6: memref<1x1x32x2xf32, #tpu.memory_space<vmem>>) attributes {dimension_semantics = [#tpu.dimension_semantics<parallel>, #tpu.dimension_semantics<parallel>], iteration_bounds = array<i64: 2, 2>, scalar_prefetch = 0 : i64, scratch_operands = 0 : i64, tpu.core_type = #tpu.core_type<tc>, window_params = [{transform_indices = @transform_0, window_bounds = array<i64: 1, 16, 128>}, {pipeline_mode = #tpu.pipeline_mode<synchronous>, transform_indices = @transform_1, window_bounds = array<i64: 32, 16>}, {pipeline_mode = #tpu.pipeline_mode<synchronous>, transform_indices = @transform_2, window_bounds = array<i64: 32, 2>}, {transform_indices = @transform_3, window_bounds = array<i64: 1, 32, 128>}, {transform_indices = @transform_4, window_bounds = array<i64: 1, 1, 32, 2>}]} {
    %c0 = arith.constant 0 : index
    %c0_0 = arith.constant 0 : index
    %0 = vector.load %arg4[%c0, %c0_0] : memref<32x2xf32, #tpu.memory_space<vmem>>, vector<32x1xf32>
    %c0_1 = arith.constant 0 : index
    %c1 = arith.constant 1 : index
    %1 = vector.load %arg4[%c0_1, %c1] : memref<32x2xf32, #tpu.memory_space<vmem>>, vector<32x1xf32>
    %c0_2 = arith.constant 0 : index
    %c0_3 = arith.constant 0 : index
    %2 = vector.load %arg3[%c0_2, %c0_3] : memref<32x16xbf16, #tpu.memory_space<vmem>>, vector<32x16xbf16>
    %c0_4 = arith.constant 0 : index
    %c0_5 = arith.constant 0 : index
    %c0_6 = arith.constant 0 : index
    %3 = vector.load %arg2[%c0_4, %c0_5, %c0_6] : memref<1x16x128xbf16, #tpu.memory_space<vmem>>, vector<1x16x128xbf16>
    %4 = vector.shape_cast %3 : vector<1x16x128xbf16> to vector<16x128xbf16>
    %cst = arith.constant dense<0.000000e+00> : vector<32x128xf32>
    %5 = tpu.matmul %2, %4, %cst {dimension_numbers = #tpu.dot_dimension_numbers<[1], [0], [0], [1], [0, 0, 1, 1], [], []>} : vector<32x16xbf16>, vector<16x128xbf16>, vector<32x128xf32> -> vector<32x128xf32>
    %6 = vector.broadcast %0 : vector<32x1xf32> to vector<32x128xf32>
    %7 = arith.addf %5, %6 : vector<32x128xf32>
    %cst_7 = arith.constant 0.000000e+00 : f32
    %8 = vector.broadcast %cst_7 : f32 to vector<32x128xf32>
    %9 = arith.cmpf ogt, %7, %8 : vector<32x128xf32>
    %10 = vector.broadcast %1 : vector<32x1xf32> to vector<32x128xf32>
    %11 = arith.mulf %7, %10 : vector<32x128xf32>
    %12 = arith.select %9, %7, %11 : vector<32x128xi1>, vector<32x128xf32>
    %13 = tpu.iota {dimensions = array<i32: 1>} : vector<1x128xi32>
    %c128_i32 = arith.constant 128 : i32
    %14 = arith.muli %arg1, %c128_i32 : i32
    %15 = vector.broadcast %14 : i32 to vector<1x128xi32>
    %16 = arith.addi %13, %15 : vector<1x128xi32>
    %c64_i32 = arith.constant 64 : i32
    %17 = vector.broadcast %c64_i32 : i32 to vector<1x128xi32>
    %18 = arith.cmpi slt, %16, %17 : vector<1x128xi32>
    %cst_8 = arith.constant 0.000000e+00 : f32
    %19 = vector.shape_cast %18 : vector<1x128xi1> to vector<1x128xi1>
    %20 = vector.broadcast %19 : vector<1x128xi1> to vector<32x128xi1>
    %21 = vector.broadcast %cst_8 : f32 to vector<32x128xf32>
    %22 = arith.select %20, %12, %21 : vector<32x128xi1>, vector<32x128xf32>
    %23 = arith.truncf %22 : vector<32x128xf32> to vector<32x128xbf16>
    %c0_9 = arith.constant 0 : index
    %c0_10 = arith.constant 0 : index
    %c0_11 = arith.constant 0 : index
    %24 = vector.load %arg5[%c0_9, %c0_10, %c0_11] : memref<1x32x128xbf16, #tpu.memory_space<vmem>>, vector<1x32x128xbf16>
    %25 = vector.shape_cast %24 : vector<1x32x128xbf16> to vector<32x128xbf16>
    %26 = vector.shape_cast %23 : vector<32x128xbf16> to vector<1x32x128xbf16>
    tpu.vector_store %arg5[%c0_9, %c0_10, %c0_11], %26 {strides = array<i32>} : memref<1x32x128xbf16, #tpu.memory_space<vmem>>, vector<1x32x128xbf16>,
    %cst_12 = arith.constant dense<0.000000e+00> : vector<32xf32>
    %27 = vector.multi_reduction <add>, %22, %cst_12 [1] : vector<32x128xf32> to vector<32xf32>
    %28 = vector.shape_cast %27 : vector<32xf32> to vector<32x1xf32>
    %c0_13 = arith.constant 0 : index
    %c0_14 = arith.constant 0 : index
    %c0_15 = arith.constant 0 : index
    %c0_16 = arith.constant 0 : index
    %29 = vector.load %arg6[%c0_13, %c0_14, %c0_15, %c0_16] : memref<1x1x32x2xf32, #tpu.memory_space<vmem>>, vector<1x1x32x1xf32>
    %30 = vector.shape_cast %29 : vector<1x1x32x1xf32> to vector<32x1xf32>
    %31 = vector.shape_cast %28 : vector<32x1xf32> to vector<1x1x32x1xf32>
    tpu.vector_store %arg6[%c0_13, %c0_14, %c0_15, %c0_16], %31 {strides = array<i32>} : memref<1x1x32x2xf32, #tpu.memory_space<vmem>>, vector<1x1x32x1xf32>,
    %32 = arith.mulf %22, %22 : vector<32x128xf32>
    %cst_17 = arith.constant dense<0.000000e+00> : vector<32xf32>
    %33 = vector.multi_reduction <add>, %32, %cst_17 [1] : vector<32x128xf32> to vector<32xf32>
    %34 = vector.shape_cast %33 : vector<32xf32> to vector<32x1xf32>
    %c0_18 = arith.constant 0 : index
    %c0_19 = arith.constant 0 : index
    %c0_20 = arith.constant 0 : index
    %c1_21 = arith.constant 1 : index
    %35 = vector.load %arg6[%c0_18, %c0_19, %c0_20, %c1_21] : memref<1x1x32x2xf32, #tpu.memory_space<vmem>>, vector<1x1x32x1xf32>
    %36 = vector.shape_cast %35 : vector<1x1x32x1xf32> to vector<32x1xf32>
    %37 = vector.shape_cast %34 : vector<32x1xf32> to vector<1x1x32x1xf32>
    tpu.vector_store %arg6[%c0_18, %c0_19, %c0_20, %c1_21], %37 {strides = array<i32>} : memref<1x1x32x2xf32, #tpu.memory_space<vmem>>, vector<1x1x32x1xf32>,
    return
  }
  func.func @transform_0(%arg0: i32, %arg1: i32) -> (i32, i32, i32) {
    %c0_i32 = arith.constant 0 : i32
    %c0_i32_0 = arith.constant 0 : i32
    return %arg0, %c0_i32, %arg1 : i32, i32, i32
  }
  func.func @transform_1(%arg0: i32, %arg1: i32) -> (i32, i32) {
    %c0_i32 = arith.constant 0 : i32
    %c0_i32_0 = arith.constant 0 : i32
    %c0_i32_1 = arith.constant 0 : i32
    return %c0_i32, %c0_i32_0 : i32, i32
  }
  func.func @transform_2(%arg0: i32, %arg1: i32) -> (i32, i32) {
    %c0_i32 = arith.constant 0 : i32
    %c0_i32_0 = arith.constant 0 : i32
    %c0_i32_1 = arith.constant 0 : i32
    return %c0_i32, %c0_i32_0 : i32, i32
  }
  func.func @transform_3(%arg0: i32, %arg1: i32) -> (i32, i32, i32) {
    %c0_i32 = arith.constant 0 : i32
    %c0_i32_0 = arith.constant 0 : i32
    return %arg0, %c0_i32, %arg1 : i32, i32, i32
  }
  func.func @transform_4(%arg0: i32, %arg1: i32) -> (i32, i32, i32, i32) {
    %c0_i32 = arith.constant 0 : i32
    %c0_i32_0 = arith.constant 0 : i32
    %c0_i32_1 = arith.constant 0 : i32
    return %arg0, %arg1, %c0_i32, %c0_i32_0 : i32, i32, i32, i32
  }
}

</mosaic_0001>

<bundles_post_ra>
// kernel: tpu_custom_call.1
= control target key start
LH: loop header
LB: loop body
LE: loop exit
PB: predicated region body
PF: predicated region fallthrough
CT: control target
= control target key end

     0   :  { %s1071_s0 = inlined_call_operand.vmem [shape: bf16[2,16,256], index: 0, kind: input, shape index: {}]   ;;  %s1072_s1 = inlined_call_operand.vmem [shape: bf16[32,16], index: 1, kind: input, shape index: {}]   ;;  %s1073_s2 = inlined_call_operand.vmem [shape: f32[32,2], index: 2, kind: input, shape index: {}]   ;;  %s1074_s3 = inlined_call_operand.hbm [shape: bf16[2,32,256], index: 3, kind: output, shape index: {0}]   ;;  %s1075_s4 = inlined_call_operand.vmem [shape: f32[2,2,32,2], index: 4, kind: output, shape index: {1}]  }
   0x1   :  { %1076 = sst [smem:[#allocation6_spill]] %s1071_s0 }
   0x2   :  { %10 = vsyncpa [#allocation4], 0 }
   0x3   :  { %12 = vsyncpa [#allocation4 + $0x1], 0  ;;  %s888_s15 = smov 0   ;;  %s890_s16 = smov 0  }
   0x4   :  { %s892_s17 = smov 0   ;;  %s894_s18 = smov 0  }
   0x5   :  { %s896_s19 = smov 0   ;;  %s898_s20 = smov 0  }
   0x6   :  { %s900_s21 = smov 0   ;;  %s902_s22 = smov 0  }
   0x7 LB: > { %s626_s23 = sadd.s32 4294967295, %s855_s22   ;;  %s627_s24 = sadd.s32 4294967294, %s855_s22   ;;  %s855_s22 = sphi %s902_s22, %s18_s22   ;;  %s851_s21 = sphi %s900_s21, %s1087_s21   ;;  %s847_s20 = sphi %s898_s20, %s1086_s20   ;;  %s843_s19 = sphi %s896_s19, %s1085_s19   ;;  %s839_s18 = sphi %s894_s18, %s1084_s18   ;;  %s835_s17 = sphi %s892_s17, %s1083_s17   ;;  %s831_s16 = sphi %s890_s16, %s1082_s16   ;;  %s827_s15 = sphi %s888_s15, %s1081_s15  }
   0x8   : > { %s27_s25 = sadd.s32 1, %s847_s20  ;;  %s30_s26 = sadd.s32 1, %s851_s21 }
   0x9   : > { %p28_p0 = scmp.ge.s32.totalorder %s27_s25, 2  ;;  %p46_p1 = scmp.ne.s32.totalorder %s835_s17, %s831_s16 }
   0xa   : > { %p47_p2 = scmp.eq.s32.totalorder %s855_s22, 0  ;;  %p120_p5 = scmp.eq.s32.totalorder %s626_s23, 3 }
   0xb   : > { %s1089_s25 = smov (%p28_p0, %s27_s25), 0  ;;  %s1091_s26 = smov (!%p28_p0, %s30_s26), %s851_s21 }
   0xc   : > { %s35_s27 = ssub.s32 %s847_s20, %s1089_s25  ;;  %p940_p3 = por %p47_p2, %p46_p1 }
   0xd   : > { %p32_p4 = scmp.ge.s32.totalorder %s1091_s26, 2  ;;  %p125_p6 = scmp.ne.s32.totalorder %s831_s16, %s827_s15 }
   0xe   : > { %p126_p7 = scmp.eq.s32.totalorder %s627_s24, 3  ;;  %p948_p8 = por %p120_p5, %p46_p1 }
   0xf   : > { %s1093_s26 = smov (%p32_p4, %s1091_s26), 0  ;;  %s39_s7 = sadd.s32 1, %s835_s17 }
  0x10   : > { %p952_p9 = por %p126_p7, %p125_p6  ;;  %s34_s5 = ssub.s32 %s851_s21, %s1093_s26 }
  0x11   : > { %s36_s6 = sor.u32 %s35_s27, %s34_s5  ;;  %p629_p11 = scmp.ge.s32.totalorder %s855_s22, 4 }
  0x12   : > { %p37_p10 = scmp.eq.s32.totalorder %s36_s6, 0 }
  0x13   : > { %176 = sbr.rel (%p629_p11) target bundleno = 37 (0x25), region = 24 }
  0x14   : > { %s960_s8 = scalar_select %p37_p10, %s835_s17, %s39_s7  }
  0x1a   : > { %179 = sbr.rel (!%p940_p3) target bundleno = 37 (0x25), region = 28  ;;  %s181_s9 = sand.u32 (%p940_p3), 1, %s835_s17  }
  0x1b   : > { %s631_s10 = sshll.u32 (%p940_p3), %s851_s21, 2  ;;  %s630_s11 = sshll.u32 (%p940_p3), %s181_s9, 3 }
  0x1c   : > { %s185_s12 = sadd.s32 (%p940_p3), %s847_s20, %s631_s10  ;;  %s1080_s0 = sld [smem:[#allocation6_spill]] (%p940_p3) }
  0x1d   : > { %s632_s13 = sshll.u32 (%p940_p3), %s185_s12, 2  ;;  %s183_s27 = scalar_lea.vmem (%p940_p3), [#allocation2], %s630_s11 }
  0x22   : > { %s187_s24 = scalar_lea.vmem %s1080_s0, %s632_s13 }
  0x23   : > { %v203_v0 = vld [vmem:[%s187_s24] sm:$0xf]  ;;  %v205_v1 = vld [vmem:[%s187_s24 + $0x8] sm:$0xf] }
  0x24   : > { %204 = vst [vmem:[%s183_s27] sm:$0xf] %v203_v0  ;;  %206 = vst [vmem:[%s183_s27 + $0x4] sm:$0xf] %v205_v1 }
  0x25 PF: > { %p633_p12 = scmp.ge.s32.totalorder %s855_s22, 1  ;;  %p232_p13 = scmp.lt.s32.totalorder %s855_s22, 5 }
  0x27   : > { %p233_p0 = pnand %p633_p12, %p232_p13 }
  0x28   : > { %s974_s28 = sand.u32 (!%p233_p0), 1, %s831_s16   ;;  %v759_v2 = vld [vmem:[%s1072_s1] sm:$0xff] (!%p233_p0)   ;;  %vm329_vm0 = vcmask (!%p233_p0), 130048   ;;  %v285_v3 = vld [vmem:[%s1073_s2 + $0x10] sm:$0xff] (!%p233_p0)  ;;  %v857_v5 = vmov (!%p233_p0), 0   ;;  %v760_v7 = vld [vmem:[%s1072_s1 + $0x8] sm:$0xff] (!%p233_p0)   ;;  %v413_v15 = vlaneseq (!%p233_p0) }
  0x29   : > { %236 = sbr.rel (%p233_p0) target bundleno = 422 (0x1a6), region = 69  ;;  %s634_s7 = sshll.u32 (!%p233_p0), %s974_s28, 3  ;;  %674 = vmatprep.mubr.msk.bf16.mxu0 (!%p233_p0), %vm329_vm0, %v759_v2  ;;  %755 = vset.pattern.permute.xlu1 (!%p233_p0), %v857_v5  ;;  %v283_v6 = vld [vmem:[%s1073_s2] sm:$0xff] (!%p233_p0)  ;;  %v286_v8 = vld [vmem:[%s1073_s2 + $0x18] sm:$0xff] (!%p233_p0)  ;;  %v284_v9 = vld [vmem:[%s1073_s2 + $0x8] sm:$0xff] (!%p233_p0)  ;;  %v858_v10 = vmov (!%p233_p0), 1  }
  0x2a   : > { %s241_s11 = scalar_lea.vmem (!%p233_p0), [#allocation2], %s634_s7  ;;  %754 = vset.pattern.permute.xlu0 (!%p233_p0), %v857_v5  ;;  %305 = vperm.xlu1 (!%p233_p0), %755, %v285_v3   ;;  %s644_s7 = sshll.u32 (!%p233_p0), %s839_s18, 7  ;;  %v414_v17 = vand.u32 (!%p233_p0), 127, %v413_v15 }
  0x2b   : > { %v758_v4 = vld [vmem:[%s241_s11] sm:$0xff] (!%p233_p0)   ;;  %295 = vperm.xlu0 (!%p233_p0), %754, %v283_v6   ;;  %v416_v19 = vstv (!%p233_p0), %s644_s7  ;;  %s635_s9 = sshll.u32 (!%p233_p0), %s974_s28, 4  ;;  %s650_s12 = sshll.u32 (!%p233_p0), %s843_s19, 3 }
  0x2c   : > { %672 = vmatprep.subr.bf16.mxu0 (!%p233_p0), %v758_v4  ;;  %v417_v20 = vadd.s32 (!%p233_p0), %v416_v19, %v414_v17  ;;  %s261_s10 = scalar_lea.vmem (!%p233_p0), [#allocation3], %s635_s9  ;;  %s496_s13 = sadd.s32 (!%p233_p0), %s839_s18, %s650_s12 }
  0x2d   : > { %673 = vmatpush3.bf16.msra.mxu0 (!%p233_p0), %v758_v4  ;;  %s499_s11 = sshll.u32 (!%p233_p0), %s261_s10, 4  ;;  %s651_s14 = sshll.u32 (!%p233_p0), %s496_s13, 6  ;;  %s1005_s11 = int_to_ptr.vmem [resolvable:$true] %s499_s11 }
  0x2e   : > { %310 = vperm.xlu1 (!%p233_p0), %755, %v286_v8   ;;  %vm418_vm2 = vcmp.lt.s32.totalorder (!%p233_p0), %v417_v20, 64  ;;  %s1010_s27 = scalar_lea.hbm (!%p233_p0), %s1074_s3, %s651_s14  ;;  %s476_s5 = scalar_lea.sflag (!%p233_p0), [#allocation4], %s974_s28 }
  0x2f   : > { %300 = vperm.xlu0 (!%p233_p0), %754, %v284_v9   ;;  %s761_s6 = scalar_lea.vmem (!%p233_p0), %s1005_s11, 256  ;;  %s859_s7 = smov (!%p233_p0), [#allocation3]  }
  0x30   : > { %675 = vmatmul.mubr.msk.bf16.vlgmr.msra.gmra.mrb[0].mxu0 %vm329_vm0, %v760_v7  ;;  %p762_p1 = scmp.ne.s32.totalorder %s1005_s11, %s761_s6  ;;  %s765_s9 = sshll.u32 %s859_s7, 4  ;;  %s766_s9 = int_to_ptr.vmem [resolvable:$false] %s765_s9 }
  0x31   : > { %p768_p4 = scmp.lt.s32.totalorder %s1005_s11, %s766_s9 }
  0x32   : > { %757 = vset.pattern.permute.xlu1 %v858_v10  ;;  %p763_p2 = pnand %p762_p1, %p948_p8 }
  0x33   : > { %394 = vperm.xlu1 %757, %v284_v9   ;;  %756 = vset.pattern.permute.xlu0 %v858_v10 }
  0x34   : > { %390 = vperm.xlu0 %756, %v283_v6   ;;  %p764_p3 = pneg %p763_p2 }
  0x37   : > { %398 = vperm.xlu1 %757, %v285_v3  }
  0x38   : > { %402 = vperm.xlu0 %756, %v286_v8  }
  0xa9   : > { %v306_v11 = vpop.permute.xlu1 %305 }
  0xaa   : > { %v296_v12 = vpop.permute.xlu0 %295 }
  0xad   : > { %v311_v13 = vpop.permute.xlu1 %310 }
  0xae   : > { %v301_v14 = vpop.permute.xlu0 %300 }
  0xb2   : > { %v395_v16 = vpop.permute.xlu1 %394 }
  0xb3   : > { %v391_v18 = vpop.permute.xlu0 %390 }
  0xb6   : > { %v399_v22 = vpop.permute.xlu1 %398 }
  0xb7   : > { %v403_v27 = vpop.permute.xlu0 %402 }
 0x103   : > { %v676_v21 = vpop.f32.mrb[0].mxu0 }
 0x104   : > { %v379_v23 = vadd.f32 %v676_v21, %v306_v11  ;;  %v370_v24 = vpop.f32.mrb[1].mxu0 }
 0x105   : > { %v371_v25 = vadd.f32 %v370_v24, %v296_v12  ;;  %v677_v26 = vpop.f32.mrb[2].mxu0 }
 0x106   : > { %v407_v28 = vmul.f32 %v399_v22, %v379_v23  ;;  %v382_v29 = vadd.f32 %v677_v26, %v311_v13  ;;  %v373_v30 = vpop.f32.mrb[3].mxu0  ;;  %vm387_vm1 = vcmp.gt.f32.partialorder %v379_v23, 0.0 }
 0x107   : > { %v405_v31 = vmul.f32 %v391_v18, %v371_v25  ;;  %v374_v32 = vadd.f32 %v373_v30, %v301_v14  ;;  %vm385_vm3 = vcmp.gt.f32.partialorder %v371_v25, 0.0 }
 0x108   : > { %v408_v33 = vmul.f32 %v403_v27, %v382_v29  ;;  %v411_v34 = vsel %vm387_vm1, %v379_v23, %v407_v28  ;;  %vm388_vm4 = vcmp.gt.f32.partialorder %v382_v29, 0.0 }
 0x109   : > { %v406_v35 = vmul.f32 %v395_v16, %v374_v32  ;;  %v423_v36 = vsel %vm418_vm2, %v411_v34, 0.0  ;;  %v409_v37 = vsel %vm385_vm3, %v371_v25, %v405_v31  ;;  %vm386_vm5 = vcmp.gt.f32.partialorder %v374_v32, 0.0 }
 0x10a   : > { %449 = vadd.xlane.f32.xlu0 %v423_v36  ;;  %v421_v38 = vsel %vm418_vm2, %v409_v37, 0.0  ;;  %v412_v39 = vsel %vm388_vm4, %v382_v29, %v408_v33  ;;  %v460_v47 = vmul.f32 %v423_v36, %v423_v36 }
 0x10b   : > { %445 = vadd.xlane.f32.xlu1 %v421_v38  ;;  %v410_v40 = vsel %vm386_vm5, %v374_v32, %v406_v35  ;;  %v424_v41 = vsel %vm418_vm2, %v412_v39, 0.0  ;;  %v458_v45 = vmul.f32 %v421_v38, %v421_v38 }
 0x10c   : > { %v422_v42 = vsel %vm418_vm2, %v410_v40, 0.0  ;;  %v666_v43 = vpack.c.bf16 %v424_v41, %v423_v36  ;;  %v461_v48 = vmul.f32 %v424_v41, %v424_v41 }
 0x10d   : > { %v661_v44 = vpack.c.bf16 %v422_v42, %v421_v38  ;;  %v459_v46 = vmul.f32 %v422_v42, %v422_v42 }
 0x10e   : > { %447 = vadd.xlane.f32.xlu0 %v422_v42  ;;  %668 = vst [vmem:[%s261_s10 + $0x8] sm:$0xff] %v666_v43  }
 0x10f   : > { %662 = vst [vmem:[%s261_s10] sm:$0xff] %v661_v44   ;;  %451 = vadd.xlane.f32.xlu1 %v424_v41  ;;  %s767_s10 = scalar_lea.vmem %s766_s9, 512 }
 0x110   : > { %p769_p5 = scmp.lt.s32.totalorder %s767_s10, %s761_s6 }
 0x112   : > { %462 = vadd.xlane.f32.xlu0 %v458_v45  ;;  %p770_p6 = por %p769_p5, %p768_p4 }
 0x113   : > { %464 = vadd.xlane.f32.xlu1 %v459_v46 }
 0x114   : > { %p771_p7 = pnand %p770_p6, %p764_p3 }
 0x116   : > { %466 = vadd.xlane.f32.xlu0 %v460_v47 }
 0x117   : > { %468 = vadd.xlane.f32.xlu1 %v461_v48 }
 0x118   : > { %774 = shalt.err (!%p771_p7)
}
 0x119   : > { %s775_s12 = scalar_lea.hbm %s1010_s27, 256  ;;  %s779_s23 = scalar_lea.hbm %s1074_s3, 1024 }
 0x11a   : > { %p776_p10 = scmp.ne.s32.totalorder %s1010_s27, %s775_s12  ;;  %p780_p13 = scmp.lt.u32.totalorder %s1010_s27, %s1074_s3 }
 0x11b   : > { %p781_p0 = scmp.lt.u32.totalorder %s779_s23, %s775_s12  ;;  %p783_p2 = scmp.lt.u32.totalorder %s775_s12, %s1010_s27 }
 0x11c   : > { %p777_p11 = pnand %p776_p10, %p948_p8 }
 0x11d   : > { %p782_p1 = por %p781_p0, %p780_p13 }
 0x11e   : > { %p778_p12 = pneg %p777_p11 }
 0x11f   : > { %p784_p3 = por %p783_p2, %p782_p1 }
 0x121   : > { %p785_p4 = pnand %p784_p3, %p778_p12 }
 0x123   : > { %788 = shalt.err (!%p785_p4)
}
 0x124   : > { %s860_s6 = smov 64   ;;  %s861_s9 = smov 128   ;;  %vm453_vm6 = vcmask 7168   ;;  %vm470_vm7 = vcmask 15368  }
 0x125   : > { %s862_s10 = smov 4   ;;  %p273_p5 = scmp.lt.s32.totalorder %s843_s19, 1 }
 0x126   : > { %678 = dma.vmem_to_hbm [thread:$0]  (%p948_p8), %s1005_s11, 256, %s1010_s27, %s476_s5, %s860_s6, %s861_s9, %s862_s10  }
 0x127   : > { %p275_p6 = scmp.lt.s32.totalorder %s839_s18, 1  ;;  %s1095_s19 = smov (!%p273_p5, %s843_s19), 1 }
 0x128   : > { %s637_s13 = sshll.u32 %s1095_s19, 3 }
 0x129   : > { %s1097_s18 = smov (!%p275_p6, %s839_s18), 1 }
 0x12a   : > { %s636_s12 = sshll.u32 %s1097_s18, 2 }
 0x12b   : > { %s279_s14 = sadd.s32 %s637_s13, %s636_s12 }
 0x12c   : > { %s638_s23 = sshll.u32 %s279_s14, 3 }
 0x12d   : > { %s281_s0 = scalar_lea.vmem %s1075_s4, %s638_s23 }
 0x197   : > { %v450_v49 = vpop.xlane.xlu0 %449 }
 0x198   : > { %456 = vst.msk [vmem:[%s281_s0 + $0x10] sm:$0xff] %vm453_vm6, %v450_v49  ;;  %v446_v50 = vpop.xlane.xlu1 %445 }
 0x199   : > { %454 = vst.msk [vmem:[%s281_s0] sm:$0xff] %vm453_vm6, %v446_v50 }
 0x19b   : > { %v448_v51 = vpop.xlane.xlu0 %447 }
 0x19c   : > { %455 = vst.msk [vmem:[%s281_s0 + $0x8] sm:$0xff] %vm453_vm6, %v448_v51  ;;  %v452_v52 = vpop.xlane.xlu1 %451 }
 0x19d   : > { %457 = vst.msk [vmem:[%s281_s0 + $0x18] sm:$0xff] %vm453_vm6, %v452_v52 }
 0x19f   : > { %v463_v53 = vpop.xlane.xlu0 %462 }
 0x1a0   : > { %471 = vst.msk [vmem:[%s281_s0] sm:$0xff] %vm470_vm7, %v463_v53  ;;  %v465_v54 = vpop.xlane.xlu1 %464 }
 0x1a1   : > { %472 = vst.msk [vmem:[%s281_s0 + $0x8] sm:$0xff] %vm470_vm7, %v465_v54 }
 0x1a3   : > { %v467_v55 = vpop.xlane.xlu0 %466 }
 0x1a4   : > { %473 = vst.msk [vmem:[%s281_s0 + $0x10] sm:$0xff] %vm470_vm7, %v467_v55  ;;  %v469_v56 = vpop.xlane.xlu1 %468 }
 0x1a5   : > { %474 = vst.msk [vmem:[%s281_s0 + $0x18] sm:$0xff] %vm470_vm7, %v469_v56 }
 0x1a6 PF: > { %p684_p8 = scmp.ge.s32.totalorder %s855_s22, 2  ;;  %s517_s18 = sand.u32 1, %s827_s15  }
 0x1a7   : > { %s518_s19 = scalar_lea.sflag [#allocation4], %s517_s18 }
 0x1a8   : > { %p681_p7 = pnand %p684_p8, %p952_p9 }
 0x1aa   : > { %822 = dma.done.wait (!%p681_p7), %s518_s19, 256  }
 0x1ab   : > { %824 = vsyncadd (!%p681_p7), %s518_s19, 4294967040  ;;  %s18_s22 = sadd.s32 1, %s855_s22   ;;  %s1081_s15 = smov %s831_s16 }
 0x1ac   : > { %p15_p10 = scmp.ge.s32.totalorder %s18_s22, 6   ;;  %s1082_s16 = smov %s835_s17 }
 0x1ad   : > { %s1083_s17 = smov %s960_s8  ;;  %s1084_s18 = smov %s847_s20 }
 0x1ae   : > { %s1085_s19 = smov %s851_s21  ;;  %s1086_s20 = smov %s1089_s25 }
 0x1af   : > { %s1087_s21 = smov %s1093_s26  ;;  %17 = sbr.rel (!%p15_p10) target bundleno = 7 (0x7), region = 125 }
 0x1b6   :  { %535 = vsyncpa [#allocation4], 1 }
 0x1b7   :  { %537 = vsyncpa [#allocation4 + $0x1], 1 }

</bundles_post_ra>
